<compile_context>
chip_gen: v5e
topology: v5e:2x2
jax: 0.10.0
libtpu: 0.0.40
codegen_flags: <defaults>
</compile_context>

<pallas_src>
import numpy as np
import jax
import jax.numpy as jnp
from jax.experimental import pallas as pl
from jax.experimental.pallas import tpu as pltpu


# ----------------------------------------------------------------------------
# Deterministic parameter construction (replaces librosa / scipy dependencies)
# ----------------------------------------------------------------------------
def _hz_to_mel_htk(f):
    return 2595.0 * np.log10(1.0 + np.asarray(f, dtype=np.float64) / 700.0)


def _mel_to_hz_htk(m):
    return 700.0 * (10.0 ** (np.asarray(m, dtype=np.float64) / 2595.0) - 1.0)


def mel_filterbank_htk(sr, n_fft, n_mels, fmin, fmax):
    """librosa.filters.mel(..., htk=True, norm='slaney') re-implemented in numpy."""
    if fmax is None:
        fmax = sr / 2.0
    n_freqs = 1 + n_fft // 2
    fftfreqs = np.linspace(0.0, sr / 2.0, n_freqs)
    mel_pts = np.linspace(_hz_to_mel_htk(fmin), _hz_to_mel_htk(fmax), n_mels + 2)
    mel_f = _mel_to_hz_htk(mel_pts)

    fdiff = np.diff(mel_f)
    ramps = np.subtract.outer(mel_f, fftfreqs)
    weights = np.zeros((n_mels, n_freqs), dtype=np.float64)
    for i in range(n_mels):
        lower = -ramps[i] / fdiff[i]
        upper = ramps[i + 2] / fdiff[i + 1]
        weights[i] = np.maximum(0.0, np.minimum(lower, upper))
    # slaney normalization (librosa default)
    enorm = 2.0 / (mel_f[2 : n_mels + 2] - mel_f[:n_mels])
    weights *= enorm[:, np.newaxis]
    return weights.astype(np.float32)


def hann_window(win_length):
    n = np.arange(win_length, dtype=np.float64)
    return 0.5 - 0.5 * np.cos(2.0 * np.pi * n / win_length)


def fourier_bases(filter_length, win_length):
    """Windowed real/imag DFT bases, matching rmvpe's STFT forward_basis."""
    fb = np.fft.fft(np.eye(filter_length))
    cutoff = filter_length // 2 + 1
    real_b = np.real(fb[:cutoff, :])
    imag_b = np.imag(fb[:cutoff, :])
    win = hann_window(win_length)
    # pad_center window to filter_length
    lpad = (filter_length - win_length) // 2
    win_full = np.zeros(filter_length, dtype=np.float64)
    win_full[lpad : lpad + win_length] = win
    real_b = (real_b * win_full[None, :]).astype(np.float32)
    imag_b = (imag_b * win_full[None, :]).astype(np.float32)
    return real_b, imag_b


def _round_up(x, m):
    return ((x + m - 1) // m) * m


# ----------------------------------------------------------------------------
# Pallas kernel: fused STFT matmul -> magnitude -> mel matmul -> log-clamp
# Per grid step (b, j): one frame tile of TF frames of batch b.
# ----------------------------------------------------------------------------
def _make_mel_kernel(c_pad, clamp):
    def mel_kernel(frames_ref, basis_ref, melb_ref, out_ref):
        frames = frames_ref[0]                                   # (N, TF)
        # Single fused MXU matmul: (2*C_pad, N) @ (N, TF) -> (2*C_pad, TF)
        spec = jnp.dot(basis_ref[...], frames,
                       preferred_element_type=jnp.float32)
        real = spec[:c_pad, :]                                   # (C_pad, TF)
        imag = spec[c_pad:, :]                                   # (C_pad, TF)
        mag = jnp.sqrt(real * real + imag * imag)                # (C_pad, TF)
        # (M, C_pad) @ (C_pad, TF) -> (M, TF); padded columns are zero.
        mel = jnp.dot(melb_ref[...], mag,
                      preferred_element_type=jnp.float32)
        out_ref[0] = jnp.log(jnp.maximum(mel, clamp)).astype(out_ref.dtype)

    return mel_kernel


class MelSpectrogramPallas:
    def __init__(self, n_mel_channels, sampling_rate, win_length, hop_length,
                 n_fft=None, mel_fmin=0, mel_fmax=None, clamp=1e-5):
        n_fft = win_length if n_fft is None else n_fft
        self.n_fft = n_fft
        self.win_length = win_length
        self.hop_length = hop_length
        self.n_mel = n_mel_channels
        self.clamp = clamp
        self.cutoff = n_fft // 2 + 1
        self.pad = n_fft // 2

        C, N, M = self.cutoff, self.n_fft, self.n_mel
        # Pad cutoff so the real/imag split and the mel contraction are
        # sublane/MXU aligned.  Zero-padded rows/cols -> numerically exact.
        self.c_pad = _round_up(C, 128) if C >= 128 else _round_up(C, 8)

        mel_np = mel_filterbank_htk(sampling_rate, n_fft, n_mel_channels,
                                    mel_fmin, mel_fmax)          # (M, C)
        mel_pad = np.zeros((M, self.c_pad), dtype=np.float32)
        mel_pad[:, :C] = mel_np
        self.mel_basis = jnp.asarray(mel_pad)                    # (M, C_pad)

        rb, ib = fourier_bases(n_fft, win_length)                # (C, N) each
        fused = np.zeros((2 * self.c_pad, N), dtype=np.float32)
        fused[:C, :] = rb
        fused[self.c_pad:self.c_pad + C, :] = ib
        self.fused_basis = jnp.asarray(fused)                    # (2*C_pad, N)

    # ---- glue: reflect pad + unfold into (B, n_fft, F) (fft on sublane,
    #      frames on lanes so the in-kernel matmuls need no transpose) -------
    def _frame(self, audio):
        padded = jnp.pad(audio, ((0, 0), (self.pad, self.pad)), mode="reflect")
        T = padded.shape[1]
        n_frames = (T - self.n_fft) // self.hop_length + 1
        idx = (jnp.arange(self.n_fft)[:, None]
               + jnp.arange(n_frames)[None, :] * self.hop_length)   # (N, F)
        return padded[:, idx], n_frames                             # (B, N, F)

    def __call__(self, audio):
        audio = audio.astype(jnp.float32)
        frames, F = self._frame(audio)
        B = frames.shape[0]
        N, M, Cp = self.n_fft, self.n_mel, self.c_pad

        # Lane-dense frame tile (multiple of 128); pad F up, slice after.
        TF = 256 if F >= 1024 else 128
        F_pad = _round_up(F, TF)
        if F_pad != F:
            frames = jnp.pad(frames, ((0, 0), (0, 0), (0, F_pad - F)))

        kernel = _make_mel_kernel(Cp, self.clamp)
        out = pl.pallas_call(
            kernel,
            out_shape=jax.ShapeDtypeStruct((B, M, F_pad), jnp.float32),
            grid=(B, F_pad // TF),
            in_specs=[
                pl.BlockSpec((1, N, TF), lambda b, j: (b, 0, j)),
                pl.BlockSpec((2 * Cp, N), lambda b, j: (0, 0)),
                pl.BlockSpec((M, Cp), lambda b, j: (0, 0)),
            ],
            out_specs=pl.BlockSpec((1, M, TF), lambda b, j: (b, 0, j)),
            compiler_params=pltpu.CompilerParams(
                dimension_semantics=("parallel", "parallel"),
                vmem_limit_bytes=32 * 1024 * 1024),
        )(frames, self.fused_basis, self.mel_basis)
        return out[:, :, :F]                                     # (B, M, F)

    def reference(self, audio):
        """Pure-JAX reference for correctness checking."""
        frames, _ = self._frame(audio.astype(jnp.float32))       # (B, N, F)
        C = self.cutoff
        cos_b = self.fused_basis[:C, :]                          # (C, N)
        sin_b = self.fused_basis[self.c_pad:self.c_pad + C, :]   # (C, N)
        real = jnp.einsum("cn,bnf->bcf", cos_b, frames)
        imag = jnp.einsum("cn,bnf->bcf", sin_b, frames)
        mag = jnp.sqrt(real * real + imag * imag)
        mel = jnp.einsum("mc,bcf->bmf", self.mel_basis[:, :C], mag)
        return jnp.log(jnp.maximum(mel, self.clamp))


if __name__ == "__main__":
    # Small, module-consistent shapes:
    #   n_mel=16, sr=16000, win=n_fft=64, hop=32, audio T=480 -> 16 frames
    B, T = 2, 480
    mod = MelSpectrogramPallas(
        n_mel_channels=16, sampling_rate=16000,
        win_length=64, hop_length=32, n_fft=64,
        mel_fmin=0, mel_fmax=None, clamp=1e-5)

    key = jax.random.PRNGKey(0)
    audio = jax.random.normal(key, (B, T), dtype=jnp.float32)

    out = mod(audio)
    out = jax.block_until_ready(out)

    ref = jax.block_until_ready(mod.reference(audio))
    assert out.shape == (B, 16, 16), out.shape
    np.testing.assert_allclose(np.asarray(out), np.asarray(ref),
                               rtol=5e-4, atol=5e-4)
    print("KERNEL_OK")
</pallas_src>

<mosaic_0001>
module attributes {stable_mosaic.version = 11 : i64} {
  func.func @mel_kernel(%arg0: i32, %arg1: i32, %arg2: memref<1x64x128xf32, #tpu.memory_space<vmem>>, %arg3: memref<80x64xf32, #tpu.memory_space<vmem>>, %arg4: memref<16x40xf32, #tpu.memory_space<vmem>>, %arg5: memref<1x16x128xf32, #tpu.memory_space<vmem>>) attributes {dimension_semantics = [#tpu.dimension_semantics<parallel>, #tpu.dimension_semantics<parallel>], iteration_bounds = array<i64: 2, 1>, scalar_prefetch = 0 : i64, scratch_operands = 0 : i64, tpu.core_type = #tpu.core_type<tc>, window_params = [{transform_indices = @transform_0, window_bounds = array<i64: 1, 64, 128>}, {pipeline_mode = #tpu.pipeline_mode<synchronous>, transform_indices = @transform_1, window_bounds = array<i64: 80, 64>}, {pipeline_mode = #tpu.pipeline_mode<synchronous>, transform_indices = @transform_2, window_bounds = array<i64: 16, 40>}, {transform_indices = @transform_3, window_bounds = array<i64: 1, 16, 128>}]} {
    %c0 = arith.constant 0 : index
    %c0_0 = arith.constant 0 : index
    %c0_1 = arith.constant 0 : index
    %0 = vector.load %arg2[%c0, %c0_0, %c0_1] : memref<1x64x128xf32, #tpu.memory_space<vmem>>, vector<1x64x128xf32>
    %1 = vector.shape_cast %0 : vector<1x64x128xf32> to vector<64x128xf32>
    %c0_2 = arith.constant 0 : index
    %c0_3 = arith.constant 0 : index
    %2 = vector.load %arg3[%c0_2, %c0_3] : memref<80x64xf32, #tpu.memory_space<vmem>>, vector<80x64xf32>
    %cst = arith.constant dense<0.000000e+00> : vector<80x128xf32>
    %3 = tpu.matmul %2, %1, %cst {dimension_numbers = #tpu.dot_dimension_numbers<[1], [0], [0], [1], [0, 0, 1, 1], [], []>} : vector<80x64xf32>, vector<64x128xf32>, vector<80x128xf32> -> vector<80x128xf32>
    %4 = vector.extract_strided_slice %3 {offsets = [0, 0], sizes = [40, 128], strides = [1, 1]} : vector<80x128xf32> to vector<40x128xf32>
    %5 = vector.extract_strided_slice %3 {offsets = [40, 0], sizes = [40, 128], strides = [1, 1]} : vector<80x128xf32> to vector<40x128xf32>
    %6 = arith.mulf %4, %4 : vector<40x128xf32>
    %7 = arith.mulf %5, %5 : vector<40x128xf32>
    %8 = arith.addf %6, %7 : vector<40x128xf32>
    %9 = math.sqrt %8 : vector<40x128xf32>
    %c0_4 = arith.constant 0 : index
    %c0_5 = arith.constant 0 : index
    %10 = vector.load %arg4[%c0_4, %c0_5] : memref<16x40xf32, #tpu.memory_space<vmem>>, vector<16x40xf32>
    %cst_6 = arith.constant dense<0.000000e+00> : vector<16x128xf32>
    %11 = tpu.matmul %10, %9, %cst_6 {dimension_numbers = #tpu.dot_dimension_numbers<[1], [0], [0], [1], [0, 0, 1, 1], [], []>} : vector<16x40xf32>, vector<40x128xf32>, vector<16x128xf32> -> vector<16x128xf32>
    %cst_7 = arith.constant 9.99999974E-6 : f32
    %12 = vector.broadcast %cst_7 : f32 to vector<16x128xf32>
    %13 = arith.maximumf %11, %12 : vector<16x128xf32>
    %14 = math.log %13 : vector<16x128xf32>
    %c0_8 = arith.constant 0 : index
    %c0_9 = arith.constant 0 : index
    %c0_10 = arith.constant 0 : index
    %15 = vector.load %arg5[%c0_8, %c0_9, %c0_10] : memref<1x16x128xf32, #tpu.memory_space<vmem>>, vector<1x16x128xf32>
    %16 = vector.shape_cast %15 : vector<1x16x128xf32> to vector<16x128xf32>
    %17 = vector.shape_cast %14 : vector<16x128xf32> to vector<1x16x128xf32>
    tpu.vector_store %arg5[%c0_8, %c0_9, %c0_10], %17 {strides = array<i32>} : memref<1x16x128xf32, #tpu.memory_space<vmem>>, vector<1x16x128xf32>,
    return
  }
  func.func @transform_0(%arg0: i32, %arg1: i32) -> (i32, i32, i32) {
    %c0_i32 = arith.constant 0 : i32
    %c0_i32_0 = arith.constant 0 : i32
    return %arg0, %c0_i32, %arg1 : i32, i32, i32
  }
  func.func @transform_1(%arg0: i32, %arg1: i32) -> (i32, i32) {
    %c0_i32 = arith.constant 0 : i32
    %c0_i32_0 = arith.constant 0 : i32
    %c0_i32_1 = arith.constant 0 : i32
    return %c0_i32, %c0_i32_0 : i32, i32
  }
  func.func @transform_2(%arg0: i32, %arg1: i32) -> (i32, i32) {
    %c0_i32 = arith.constant 0 : i32
    %c0_i32_0 = arith.constant 0 : i32
    %c0_i32_1 = arith.constant 0 : i32
    return %c0_i32, %c0_i32_0 : i32, i32
  }
  func.func @transform_3(%arg0: i32, %arg1: i32) -> (i32, i32, i32) {
    %c0_i32 = arith.constant 0 : i32
    %c0_i32_0 = arith.constant 0 : i32
    return %arg0, %c0_i32, %arg1 : i32, i32, i32
  }
}

</mosaic_0001>

<bundles_post_ra>
// kernel: tpu_custom_call.1
= control target key start
LH: loop header
LB: loop body
LE: loop exit
PB: predicated region body
PF: predicated region fallthrough
CT: control target
= control target key end

     0   :  { %8 = vsyncpa [#allocation3], 0  ;;  %s886_s0 = inlined_call_operand.vmem [shape: f32[2,64,128], index: 0, kind: input, shape index: {}]   ;;  %s887_s1 = inlined_call_operand.vmem [shape: f32[80,64], index: 1, kind: input, shape index: {}]   ;;  %s888_s2 = inlined_call_operand.vmem [shape: f32[16,40], index: 2, kind: input, shape index: {}]   ;;  %s889_s3 = inlined_call_operand.hbm [shape: f32[2,16,128], index: 3, kind: output, shape index: {}]  }
   0x1   :  { %10 = vsyncpa [#allocation3 + $0x1], 0  ;;  %s716_s12 = smov 0   ;;  %s718_s13 = smov 0  }
   0x2   :  { %s720_s14 = smov 0   ;;  %s722_s15 = smov 0  }
   0x3   :  { %s724_s16 = smov 0   ;;  %s726_s17 = smov 0  }
   0x4 LB: > { %s500_s18 = sadd.s32 4294967295, %s692_s17   ;;  %s501_s19 = sadd.s32 4294967294, %s692_s17   ;;  %s692_s17 = sphi %s726_s17, %s16_s17   ;;  %s688_s16 = sphi %s724_s16, %s896_s16   ;;  %s684_s15 = sphi %s722_s15, %s895_s15   ;;  %s680_s14 = sphi %s720_s14, %s894_s14   ;;  %s676_s13 = sphi %s718_s13, %s893_s13   ;;  %s672_s12 = sphi %s716_s12, %s892_s12  }
   0x5   : > { %s28_s20 = sadd.s32 1, %s688_s16  ;;  %s107_s21 = sadd.s32 1, %s680_s14 }
   0x6   : > { %p30_p0 = scmp.ge.s32.totalorder %s28_s20, 2  ;;  %p117_p1 = scmp.ne.s32.totalorder %s680_s14, %s676_s13 }
   0x7   : > { %p118_p2 = scmp.eq.s32.totalorder %s500_s18, 1  ;;  %p123_p3 = scmp.ne.s32.totalorder %s676_s13, %s672_s12 }
   0x8   : > { %s898_s20 = smov (%p30_p0, %s28_s20), 0  ;;  %p124_p5 = scmp.eq.s32.totalorder %s501_s19, 1 }
   0x9   : > { %p756_p4 = por %p118_p2, %p117_p1  ;;  %s102_s23 = ssub.s32 %s688_s16, %s898_s20 }
   0xa   : > { %p504_p6 = scmp.ge.s32.totalorder %s692_s17, 1  ;;  %p105_p7 = scmp.eq.s32.totalorder %s102_s23, 0 }
   0xb   : > { %p763_p8 = por %p124_p5, %p123_p3  ;;  %p159_p9 = scmp.lt.s32.totalorder %s692_s17, 3 }
   0xc   : > { %s769_s25 = scalar_select %p105_p7, %s680_s14, %s107_s21  }
   0xd   : > { %p160_p10 = pnand %p504_p6, %p159_p9 }
   0xe   : > { %p186_p11 = scmp.lt.s32.totalorder (!%p160_p10), %s684_s15, 1  ;;  %s183_s11 = sand.u32 (!%p160_p10), 1, %s676_s13  }
   0xf   : > { %163 = sbr.rel (%p160_p10) target bundleno = 380 (0x17c), region = 32  ;;  %s505_s18 = sshll.u32 (!%p160_p10), %s183_s11, 4 }
  0x10   : > { %s526_s19 = sshll.u32 (!%p160_p10), %s684_s15, 4  ;;  %s185_s21 = scalar_lea.vmem (!%p160_p10), [#allocation2], %s505_s18 }
  0x11   : > { %s419_s28 = sshll.u32 (!%p160_p10), %s185_s21, 4  ;;  %s634_s7 = scalar_lea.hbm (!%p160_p10), %s889_s3, 32  ;;  %s420_s28 = int_to_ptr.vmem [resolvable:$true] %s419_s28 }
  0x14   : > { %s187_s26 = scalar_select %p186_p11, %s684_s15, 1  ;;  %v202_v8 = vld [vmem:[%s887_s1] sm:$0xff]  ;;  %vm212_vm0 = vcmask 523264   ;;  %v205_v9 = vld [vmem:[%s887_s1 + $0x18] sm:$0xff]  ;;  %v208_v10 = vld [vmem:[%s887_s1 + $0x30] sm:$0xff]  ;;  %vm367_vm11 = vcmask 326656  }
  0x15   : > { %v203_v11 = vld [vmem:[%s887_s1 + $0x8] sm:$0xff]  ;;  %v206_v12 = vld [vmem:[%s887_s1 + $0x20] sm:$0xff]  ;;  %v209_v13 = vld [vmem:[%s887_s1 + $0x38] sm:$0xff] }
  0x16   : > { %s525_s27 = sshll.u32 %s187_s26, 6  ;;  %v204_v14 = vld [vmem:[%s887_s1 + $0x10] sm:$0xff]  ;;  %v207_v15 = vld [vmem:[%s887_s1 + $0x28] sm:$0xff]  ;;  %v210_v16 = vld [vmem:[%s887_s1 + $0x40] sm:$0xff] }
  0x17   : > { %s193_s30 = scalar_lea.vmem %s886_s0, %s525_s27  ;;  %v211_v17 = vld [vmem:[%s887_s1 + $0x48] sm:$0xff]  ;;  %s418_s27 = scalar_lea.hbm %s889_s3, %s526_s19 }
  0x18   : > { %v201_v0 = vld [vmem:[%s193_s30 + $0x38] sm:$0xff]  ;;  %v200_v1 = vld [vmem:[%s193_s30 + $0x30] sm:$0xff]  ;;  %v199_v2 = vld [vmem:[%s193_s30 + $0x28] sm:$0xff]  ;;  %s421_s29 = sshll.u32 %s418_s27, 4  ;;  %s422_s29 = int_to_ptr.hbm [resolvable:$true] %s421_s29 }
  0x19   : > { %251 = vmatpush.msra.mxu0 %v201_v0  ;;  %527 = vmatpush.msra.mxu2 %v201_v0  ;;  %v198_v3 = vld [vmem:[%s193_s30 + $0x20] sm:$0xff]  ;;  %v197_v4 = vld [vmem:[%s193_s30 + $0x18] sm:$0xff]  ;;  %v196_v5 = vld [vmem:[%s193_s30 + $0x10] sm:$0xff]  ;;  %s628_s4 = sshra.s32 %s422_s29, 4  ;;  %s629_s4 = int_to_ptr.hbm [resolvable:$true] %s628_s4 }
  0x1a   : > { %528 = vmatpush.msra.mxu3 %v201_v0  ;;  %v195_v6 = vld [vmem:[%s193_s30 + $0x8] sm:$0xff]  ;;  %v194_v7 = vld [vmem:[%s193_s30] sm:$0xff]  ;;  %s406_s30 = scalar_lea.sflag [#allocation3], %s183_s11  ;;  %s630_s15 = scalar_lea.hbm %s629_s4, 16 }
  0x1b   : > { %252 = vmatpush.msra.mxu0 %v200_v1  ;;  %529 = vmatpush.msra.mxu2 %v200_v1  ;;  %p631_p12 = scmp.ne.s32.totalorder %s629_s4, %s630_s15  ;;  %p635_p1 = scmp.lt.s32.totalorder %s629_s4, %s889_s3 }
  0x1c   : > { %530 = vmatpush.msra.mxu3 %v200_v1  ;;  %p636_p2 = scmp.lt.s32.totalorder %s634_s7, %s630_s15 }
  0x1d   : > { %253 = vmatpush.msra.mxu0 %v199_v2  ;;  %531 = vmatpush.msra.mxu2 %v199_v2  ;;  %p632_p13 = pnand %p631_p12, %p756_p4 }
  0x1e   : > { %532 = vmatpush.msra.mxu3 %v199_v2  ;;  %p637_p3 = por %p636_p2, %p635_p1 }
  0x1f   : > { %254 = vmatpush.msra.mxu0 %v198_v3  ;;  %533 = vmatpush.msra.mxu2 %v198_v3  ;;  %p633_p0 = pneg %p632_p13 }
  0x20   : > { %534 = vmatpush.msra.mxu3 %v198_v3 }
  0x21   : > { %255 = vmatpush.msra.mxu0 %v197_v4  ;;  %535 = vmatpush.msra.mxu2 %v197_v4  ;;  %p638_p5 = pnand %p637_p3, %p633_p0 }
  0x22   : > { %536 = vmatpush.msra.mxu3 %v197_v4 }
  0x23   : > { %256 = vmatpush.msra.mxu0 %v196_v5  ;;  %537 = vmatpush.msra.mxu2 %v196_v5 }
  0x24   : > { %538 = vmatpush.msra.mxu3 %v196_v5 }
  0x25   : > { %257 = vmatpush.msra.mxu0 %v195_v6  ;;  %539 = vmatpush.msra.mxu2 %v195_v6 }
  0x26   : > { %540 = vmatpush.msra.mxu3 %v195_v6 }
  0x27   : > { %258 = vmatpush.msra.mxu0 %v194_v7  ;;  %541 = vmatpush.msra.mxu2 %v194_v7 }
  0x28   : > { %542 = vmatpush.msra.mxu3 %v194_v7  ;;  %508 = vmatmul.msk.f32.vlgmr.msra.gmra.mxu0 %vm212_vm0, %v202_v8 }
  0x29   : > { %511 = vmatmul.msk.f32.vlgmr.msra.gmra.mxu2 %vm212_vm0, %v205_v9  ;;  %514 = vmatmul.msk.f32.vlgmr.msra.gmra.mxu3 %vm212_vm0, %v208_v10 }
  0x30   : > { %509 = vmatmul.msk.f32.gmra.mxu0 %vm212_vm0, %v203_v11 }
  0x31   : > { %512 = vmatmul.msk.f32.gmra.mxu2 %vm212_vm0, %v206_v12  ;;  %515 = vmatmul.msk.f32.gmra.mxu3 %vm212_vm0, %v209_v13 }
  0x38   : > { %510 = vmatmul.msk.f32.gmra.mxu0 %vm212_vm0, %v204_v14 }
  0x39   : > { %513 = vmatmul.msk.f32.gmra.mxu2 %vm212_vm0, %v207_v15  ;;  %516 = vmatmul.msk.f32.gmra.mxu3 %vm212_vm0, %v210_v16 }
  0x41   : > { %517 = vmatmul.msk.f32.gmra.mxu3 %vm212_vm0, %v211_v17 }
  0xa5   : > { %v260_v18 = vpop.f32.mrf.mxu0 }
  0xa6   : > { %v290_v34 = vmul.f32 %v260_v18, %v260_v18 }
  0xac   : > { %v269_v19 = vpop.f32.mrf.mxu2  ;;  %v278_v20 = vpop.f32.mrf.mxu3 }
  0xad   : > { %v263_v21 = vpop.f32.mrf.mxu0  ;;  %v296_v28 = vmul.f32 %v278_v20, %v278_v20  ;;  %v293_v30 = vmul.f32 %v269_v19, %v269_v19 }
  0xae   : > { %v291_v26 = vmul.f32 %v263_v21, %v263_v21 }
  0xb0   : > { %v818_v31 = vadd.f32 %v296_v28, %v291_v26  ;;  %v365_v28 = vld [vmem:[%s888_s2] sm:$0xff] }
  0xb2   : > { %vm324_vm6 = vcmp.eq.f32.partialorder %v818_v31, inf  ;;  %vm326_vm9 = vcmp.eq.f32.partialorder %v818_v31, 0.0 }
  0xb4   : > { %v272_v22 = vpop.f32.mrf.mxu2  ;;  %v281_v23 = vpop.f32.mrf.mxu3 }
  0xb5   : > { %v266_v24 = vpop.f32.mrf.mxu0  ;;  %v297_v27 = vmul.f32 %v281_v23, %v281_v23  ;;  %v294_v40 = vmul.f32 %v272_v22, %v272_v22 }
  0xb6   : > { %v292_v25 = vmul.f32 %v266_v24, %v266_v24  ;;  %v327_v24 = vand.u32 2147483648, %v818_v31 }
  0xb8   : > { %v816_v29 = vadd.f32 %v297_v27, %v292_v25 }
  0xba   : > { %600 = vrsqrt.f32 %v816_v29  ;;  %vm336_vm4 = vcmp.eq.f32.partialorder %v816_v29, inf  ;;  %v339_v21 = vand.u32 2147483648, %v816_v29  ;;  %vm338_vm7 = vcmp.eq.f32.partialorder %v816_v29, 0.0 }
  0xbb   : > { %602 = vrsqrt.f32 %v818_v31 }
  0xbc   : > { %v275_v32 = vpop.f32.mrf.mxu2  ;;  %v284_v33 = vpop.f32.mrf.mxu3 }
  0xbd   : > { %v295_v35 = vmul.f32 %v275_v32, %v275_v32  ;;  %v298_v36 = vmul.f32 %v284_v33, %v284_v33 }
  0xbf   : > { %v821_v37 = vadd.f32 %v295_v35, %v290_v34  ;;  %v303_v38 = vadd.f32 %v298_v36, %v293_v30  ;;  %v366_v30 = vld [vmem:[%s888_s2 + $0x8] sm:$0xff] }
  0xc0   : > { %v601_v39 = vpop.eup %600 }
  0xc1   : > { %604 = vrsqrt.f32 %v303_v38  ;;  %v603_v42 = vpop.eup %602  ;;  %v330_v44 = vmul.f32 %v601_v39, %v816_v29  ;;  %vm348_vm2 = vcmp.eq.f32.partialorder %v303_v38, inf  ;;  %v351_v17 = vand.u32 2147483648, %v303_v38 }
  0xc2   : > { %606 = vrsqrt.f32 %v821_v37  ;;  %v318_v49 = vmul.f32 %v603_v42, %v818_v31  ;;  %vm350_vm5 = vcmp.eq.f32.partialorder %v303_v38, 0.0  ;;  %vm312_vm8 = vcmp.eq.f32.partialorder %v821_v37, inf }
  0xc3   : > { %v331_v51 = vmul.f32 %v601_v39, %v330_v44  ;;  %v315_v27 = vand.u32 2147483648, %v821_v37  ;;  %vm314_vm10 = vcmp.eq.f32.partialorder %v821_v37, 0.0 }
  0xc4   : > { %v287_v41 = vpop.f32.mrf.mxu3  ;;  %v319_v54 = vmul.f32 %v603_v42, %v318_v49 }
  0xc5   : > { %v299_v43 = vmul.f32 %v287_v41, %v287_v41  ;;  %v332_v55 = vmul.f32 0.5, %v331_v51 }
  0xc6   : > { %v320_v60 = vmul.f32 0.5, %v319_v54 }
  0xc7   : > { %v605_v45 = vpop.eup %604  ;;  %v304_v46 = vadd.f32 %v299_v43, %v294_v40  ;;  %v333_v62 = vsub.f32 1.5, %v332_v55 }
  0xc8   : > { %v607_v47 = vpop.eup %606  ;;  %v342_v48 = vmul.f32 %v605_v45, %v303_v38  ;;  %v321_v2 = vsub.f32 1.5, %v320_v60 }
  0xc9   : > { %608 = vrsqrt.f32 %v304_v46  ;;  %v306_v52 = vmul.f32 %v607_v47, %v821_v37  ;;  %v334_v4 = vmul.f32 %v601_v39, %v333_v62  ;;  %vm360_vm1 = vcmp.eq.f32.partialorder %v304_v46, inf }
  0xca   : > { %v343_v50 = vmul.f32 %v605_v45, %v342_v48  ;;  %v322_v8 = vmul.f32 %v603_v42, %v321_v2  ;;  %v363_v12 = vand.u32 2147483648, %v304_v46  ;;  %vm362_vm3 = vcmp.eq.f32.partialorder %v304_v46, 0.0 }
  0xcb   : > { %v307_v56 = vmul.f32 %v607_v47, %v306_v52  ;;  %v335_v10 = vmul.f32 %v334_v4, %v816_v29 }
  0xcc   : > { %v344_v53 = vmul.f32 0.5, %v343_v50  ;;  %v323_v15 = vmul.f32 %v322_v8, %v818_v31 }
  0xcd   : > { %v308_v63 = vmul.f32 0.5, %v307_v56  ;;  %v337_v18 = vsel %vm336_vm4, %v816_v29, %v335_v10 }
  0xce   : > { %v345_v59 = vsub.f32 1.5, %v344_v53  ;;  %v325_v22 = vsel %vm324_vm6, %v818_v31, %v323_v15  ;;  %v340_v23 = vsel %vm338_vm7, %v339_v21, %v337_v18 }
  0xcf   : > { %v609_v57 = vpop.eup %608  ;;  %v309_v5 = vsub.f32 1.5, %v308_v63  ;;  %v328_v26 = vsel %vm326_vm9, %v327_v24, %v325_v22 }
  0xd0   : > { %v354_v58 = vmul.f32 %v609_v57, %v304_v46  ;;  %v346_v1 = vmul.f32 %v605_v45, %v345_v59 }
  0xd1   : > { %v310_v11 = vmul.f32 %v607_v47, %v309_v5 }
  0xd2   : > { %v355_v61 = vmul.f32 %v609_v57, %v354_v58  ;;  %v347_v7 = vmul.f32 %v346_v1, %v303_v38 }
  0xd3   : > { %v311_v19 = vmul.f32 %v310_v11, %v821_v37 }
  0xd4   : > { %v356_v0 = vmul.f32 0.5, %v355_v61  ;;  %v349_v14 = vsel %vm348_vm2, %v303_v38, %v347_v7 }
  0xd5   : > { %v352_v20 = vsel %vm350_vm5, %v351_v17, %v349_v14  ;;  %v313_v25 = vsel %vm312_vm8, %v821_v37, %v311_v19 }
  0xd6   : > { %v357_v3 = vsub.f32 1.5, %v356_v0  ;;  %v316_v29 = vsel %vm314_vm10, %v315_v27, %v313_v25 }
  0xd8   : > { %v358_v6 = vmul.f32 %v609_v57, %v357_v3 }
  0xda   : > { %v359_v9 = vmul.f32 %v358_v6, %v304_v46 }
  0xdc   : > { %v361_v13 = vsel %vm360_vm1, %v304_v46, %v359_v9 }
  0xdd   : > { %v364_v16 = vsel %vm362_vm3, %v363_v12, %v361_v13 }
  0xde   : > { %385 = vmatpush.msra.mxu1 %v364_v16 }
  0xe0   : > { %386 = vmatpush.msra.mxu1 %v352_v20 }
  0xe2   : > { %387 = vmatpush.msra.mxu1 %v340_v23 }
  0xe4   : > { %388 = vmatpush.msra.mxu1 %v328_v26 }
  0xe6   : > { %389 = vmatpush.msra.mxu1 %v316_v29 }
  0xe7   : > { %518 = vmatmul.msk.f32.vlgmr.msra.gmra.mxu1 %vm367_vm11, %v365_v28 }
  0xef   : > { %519 = vmatmul.msk.f32.gmra.mxu1 %vm367_vm11, %v366_v30 }
 0x164   : > { %v391_v31 = vpop.f32.mrf.mxu1 }
 0x165   : > { %v397_v32 = vmax.f32 %v391_v31, 1e-05 }
 0x167   : > { %610 = vlog2.f32 %v397_v32 }
 0x16c   : > { %v394_v33 = vpop.f32.mrf.mxu1 }
 0x16d   : > { %v611_v34 = vpop.eup %610  ;;  %v398_v35 = vmax.f32 %v394_v33, 1e-05 }
 0x16e   : > { %v400_v36 = vmul.f32 0.6931472, %v611_v34 }
 0x16f   : > { %612 = vlog2.f32 %v398_v35 }
 0x170   : > { %403 = vst [vmem:[%s185_s21] sm:$0xff] %v400_v36 }
 0x175   : > { %v613_v37 = vpop.eup %612 }
 0x176   : > { %v402_v38 = vmul.f32 0.6931472, %v613_v37 }
 0x178   : > { %404 = vst [vmem:[%s185_s21 + $0x8] sm:$0xff] %v402_v38 }
 0x179   : > { %641 = shalt.err (!%p638_p5)
}
 0x17a   : > { %s694_s10 = smov 128   ;;  %s695_s11 = smov 8  }
 0x17b   : > { %543 = dma.vmem_to_hbm [thread:$0]  (%p756_p4), %s420_s28, 256, %s422_s29, %s406_s30, %s694_s10, %s694_s10, %s695_s11  }
 0x17c PF: > { %p549_p6 = scmp.ge.s32.totalorder %s692_s17, 2  ;;  %s436_s18 = sand.u32 1, %s672_s12  }
 0x17d   : > { %s437_s19 = scalar_lea.sflag [#allocation3], %s436_s18 }
 0x17e   : > { %p546_p7 = pnand %p549_p6, %p763_p8 }
 0x180   : > { %p547_p9 = pneg %p546_p7 }
 0x182   : > { %667 = dma.done.wait (%p547_p9), %s437_s19, 256  }
 0x183   : > { %669 = vsyncadd (%p547_p9), %s437_s19, 4294967040  ;;  %s16_s17 = sadd.s32 1, %s692_s17   ;;  %s892_s12 = smov %s676_s13 }
 0x184   : > { %p13_p10 = scmp.ge.s32.totalorder %s16_s17, 4   ;;  %s893_s13 = smov %s680_s14 }
 0x185   : > { %s894_s14 = smov %s769_s25  ;;  %s895_s15 = smov %s688_s16 }
 0x186   : > { %s896_s16 = smov %s898_s20  ;;  %15 = sbr.rel (!%p13_p10) target bundleno = 4 (0x4), region = 67 }
 0x18b   :  { %443 = vsyncpa [#allocation3], 1 }
 0x18c   :  { %445 = vsyncpa [#allocation3 + $0x1], 1 }

</bundles_post_ra>
